<compile_context>
chip_gen: v5e
topology: v5e:2x2
jax: 0.10.0
libtpu: 0.0.40
codegen_flags: <defaults>
</compile_context>

<pallas_src>
import functools

import jax
import jax.numpy as jnp
from jax.experimental import pallas as pl
from jax.experimental.pallas import tpu as pltpu


def graph_conv2_kernel(x_ref, w_ref, b_ref, o_ref, *, mxu_dtype):
    # x_ref: (tm, K) f32 row tile    w_ref: (K, N) f32 resident (pre-transposed) weight
    # b_ref: (2, N)  f32; row 0 = Linear bias (inside tanh), row 1 = module bias (outside)
    # o_ref: (tm, N) f32 or bf16 output tile
    # Optional bf16 MXU fast path: cast in-kernel (VPU slot is idle beside the
    # MXU/DMA), never in the wrapper (that would be an extra HBM pass over x).
    x = x_ref[...].astype(mxu_dtype)
    w = w_ref[...].astype(mxu_dtype)
    support = jnp.dot(x, w, preferred_element_type=jnp.float32)
    # Fused f32 epilogue: tanh -> EUP, adds -> VPU; both free beside the MXU/DMA.
    # b_lin stays inside tanh, b_extra outside (exact for any b_extra).
    # (torch.mm(support, eye) in the reference is dead code; not materialized.)
    o_ref[...] = (jnp.tanh(support + b_ref[0:1, :]) + b_ref[1:2, :]).astype(o_ref.dtype)


def _pick_row_tile(m, max_tile=1024):
    """Row tile (multiple of 16, <= max_tile) giving >=2 grid steps when M > 16.

    v7x has two TensorCores; dimension_semantics=("parallel",) only shards the
    row grid if it has >=2 steps, so even medium M is split in two.  Per-step
    overhead (~0.35 us) is negligible at these tile sizes.
    """
    if m <= 16:
        return m                      # single tiny block; nothing worth splitting
    half = -(-m // 2)                 # cdiv(m, 2)
    tm = ((half + 15) // 16) * 16     # multiple of 16 (bf16-output friendly)
    return min(tm, max_tile)


def _resident_spec_kwargs():
    """Single-buffer kwargs for operands whose block index never changes.

    Probed at BlockSpec-construction time only; a jax build without the
    pipeline_mode kwarg raises TypeError here and we fall back to the default
    double-buffered spec (costs only extra VMEM, never correctness).
    """
    try:
        pl.BlockSpec((8, 128), lambda i: (0, 0), pipeline_mode=pl.Buffered(1))
        return dict(pipeline_mode=pl.Buffered(1))
    except (TypeError, AttributeError):
        return {}


def graph_convolution2(x, w_t, b_lin, b_extra, *, tm=None,
                       use_bf16_mxu=False, out_dtype=jnp.float32):
    """y = tanh(x @ w_t + b_lin) + b_extra  (w_t is the pre-transposed Linear weight)."""
    M, K = x.shape
    Kw, N = w_t.shape
    assert K == Kw, "weight shape mismatch"

    if tm is None:
        tm = _pick_row_tile(M)
    grid = (pl.cdiv(M, tm),)          # ragged last block handled by Pallas

    # Single stacked bias operand: one fewer input stream / DMA descriptor /
    # double-buffered VMEM slab.  NOTE: the (2, N) block is only legal because
    # block_shape == the full array shape; slicing a sub-block here would trip
    # the (8, 128) tiling rule.
    b = jnp.stack([b_lin.reshape(-1), b_extra.reshape(-1)]).astype(jnp.float32)

    x = x.astype(jnp.float32)         # inputs stay f32; any bf16 cast is in-kernel
    w_t = w_t.astype(jnp.float32)

    mxu_dtype = jnp.bfloat16 if use_bf16_mxu else jnp.float32
    kernel = functools.partial(graph_conv2_kernel, mxu_dtype=mxu_dtype)

    out_isz = jnp.dtype(out_dtype).itemsize
    # VMEM budget: double-buffered x/out tiles + resident weight + stacked bias,
    # with 2x headroom; floor at the 32 MiB scoped default, cap for v7x's 64 MiB.
    vmem_bytes = 2 * tm * K * 4 + 2 * tm * N * out_isz + K * N * 4 + 2 * N * 4
    vmem_limit = int(min(max(2 * vmem_bytes, 32 << 20), 64 << 20))

    cost = pl.CostEstimate(
        flops=2 * M * K * N,
        transcendentals=M * N,
        bytes_accessed=M * K * 4 + K * N * 4 + 2 * N * 4 + M * N * out_isz,
    )

    resident_kwargs = _resident_spec_kwargs()

    def build(resident_kw):
        in_specs = [
            # x row tile (the only streamed operand).  TODO(synk): sweep
            # pipeline_mode=pl.Buffered(3) here if profiling shows exposed
            # x-DMA at large tm (wall >> compute).
            pl.BlockSpec((tm, K), lambda i: (i, 0)),
            pl.BlockSpec((K, N), lambda i: (0, 0), **resident_kw),   # weight (resident)
            pl.BlockSpec((2, N), lambda i: (0, 0), **resident_kw),   # stacked biases
        ]
        return pl.pallas_call(
            kernel,
            out_shape=jax.ShapeDtypeStruct((M, N), out_dtype),
            grid_spec=pltpu.PrefetchScalarGridSpec(
                num_scalar_prefetch=0,
                grid=grid,
                in_specs=in_specs,
                out_specs=pl.BlockSpec((tm, N), lambda i: (i, 0)),
            ),
            compiler_params=pltpu.CompilerParams(
                # Row tiles are independent -> shard across v7x's two TensorCores.
                dimension_semantics=("parallel",),
                vmem_limit_bytes=vmem_limit,
            ),
            cost_estimate=cost,
        )

    # TODO(synk): if K*N ever outgrows VMEM residency (~8M f32 elems on v7x's
    # 64 MiB, roughly 2x that on v5e/v6e after x/out tile buffers), add a K
    # grid axis marked "arbitrary" with an f32 VMEM accumulator (zero at k==0,
    # tanh+bias at the last k) and tile N in multiples of 256 (128 on v5e).
    fn = build(resident_kwargs)
    if resident_kwargs:
        try:
            return fn(x, w_t, b)
        except (ValueError, NotImplementedError, pltpu.LoweringException):
            # pipeline_mode accepted at construction but Buffered(1) rejected
            # at lowering on this jax build: fall back to double buffering.
            # (Runtime resource errors such as VMEM OOM are NOT caught here.)
            return build({})(x, w_t, b)
    return fn(x, w_t, b)


if __name__ == "__main__":

    def linear_init(key, in_f, out_f):
        # nn.Linear default init: U(-1/sqrt(in_f), 1/sqrt(in_f)) for W and b.
        bound = 1.0 / (in_f ** 0.5)
        kw, kb = jax.random.split(key)
        w = jax.random.uniform(kw, (out_f, in_f), jnp.float32, -bound, bound)
        bl = jax.random.uniform(kb, (out_f,), jnp.float32, -bound, bound)
        return w, bl

    root = jax.random.PRNGKey(0)
    k_case1, k_case2, k_case3 = jax.random.split(root, 3)

    # ---- Case 1: module's natural tiny shape (out_features == in_features, as
    #      required by torch.mm(support, eye)).  Single-block, all-f32 path.
    in_f = out_f = 128
    n_rows = 16
    kw1, kx1 = jax.random.split(k_case1)
    w, b_lin = linear_init(kw1, in_f, out_f)
    b_extra = jnp.zeros((out_f,), jnp.float32)          # nn.init.zeros_(self.bias)
    x = jax.random.normal(kx1, (n_rows, in_f), jnp.float32)

    y = jax.block_until_ready(graph_convolution2(x, w.T, b_lin, b_extra))
    y_ref = jnp.tanh(x @ w.T + b_lin) + b_extra
    assert y.shape == (n_rows, out_f) and y.dtype == jnp.float32
    assert jnp.allclose(y, y_ref, atol=1e-4, rtol=1e-4), "case 1 mismatch"

    # ---- Case 2: larger row count -> 2-step "parallel" grid (both v7x cores),
    #      in-kernel bf16 MXU fast path, bf16 output, nonzero outer bias.
    in_f = out_f = 256
    n_rows = 1024
    kw2, kx2, kb2 = jax.random.split(k_case2, 3)
    w, b_lin = linear_init(kw2, in_f, out_f)
    b_extra = 0.1 * jax.random.normal(kb2, (out_f,), jnp.float32)
    x = jax.random.normal(kx2, (n_rows, in_f), jnp.float32)

    y = jax.block_until_ready(
        graph_convolution2(x, w.T, b_lin, b_extra,
                           use_bf16_mxu=True, out_dtype=jnp.bfloat16))
    xb = x.astype(jnp.bfloat16).astype(jnp.float32)
    wb = w.T.astype(jnp.bfloat16).astype(jnp.float32)
    y_ref = jnp.tanh(xb @ wb + b_lin) + b_extra
    assert y.shape == (n_rows, out_f) and y.dtype == jnp.bfloat16
    assert jnp.allclose(y.astype(jnp.float32), y_ref, atol=5e-2, rtol=5e-2), "case 2 mismatch"

    # ---- Case 3: ragged row count (not a multiple of the tile) exercises the
    #      cdiv grid / masked last block that replaced the divisor hunting.
    in_f = out_f = 128
    n_rows = 200                                        # tm=112 -> blocks of 112 + 88
    kw3, kx3 = jax.random.split(k_case3)
    w, b_lin = linear_init(kw3, in_f, out_f)
    b_extra = jnp.zeros((out_f,), jnp.float32)
    x = jax.random.normal(kx3, (n_rows, in_f), jnp.float32)

    y = jax.block_until_ready(graph_convolution2(x, w.T, b_lin, b_extra))
    y_ref = jnp.tanh(x @ w.T + b_lin) + b_extra
    assert y.shape == (n_rows, out_f)
    assert jnp.allclose(y, y_ref, atol=1e-4, rtol=1e-4), "case 3 mismatch"

    print("KERNEL_OK")
</pallas_src>

<mosaic_0001>
module attributes {stable_mosaic.version = 11 : i64} {
  func.func @graph_conv2_kernel(%arg0: i32, %arg1: memref<16x128xf32, #tpu.memory_space<vmem>>, %arg2: memref<128x128xf32, #tpu.memory_space<vmem>>, %arg3: memref<2x128xf32, #tpu.memory_space<vmem>>, %arg4: memref<16x128xf32, #tpu.memory_space<vmem>>) attributes {dimension_semantics = [#tpu.dimension_semantics<parallel>], iteration_bounds = array<i64: 1>, scalar_prefetch = 0 : i64, scratch_operands = 0 : i64, tpu.core_type = #tpu.core_type<tc>, window_params = [{transform_indices = @transform_0, window_bounds = array<i64: 16, 128>}, {pipeline_mode = #tpu.pipeline_mode<synchronous>, transform_indices = @transform_1, window_bounds = array<i64: 128, 128>}, {pipeline_mode = #tpu.pipeline_mode<synchronous>, transform_indices = @transform_2, window_bounds = array<i64: 2, 128>}, {transform_indices = @transform_3, window_bounds = array<i64: 16, 128>}]} {
    %c0 = arith.constant 0 : index
    %c0_0 = arith.constant 0 : index
    %0 = vector.load %arg1[%c0, %c0_0] : memref<16x128xf32, #tpu.memory_space<vmem>>, vector<16x128xf32>
    %c0_1 = arith.constant 0 : index
    %c0_2 = arith.constant 0 : index
    %1 = vector.load %arg2[%c0_1, %c0_2] : memref<128x128xf32, #tpu.memory_space<vmem>>, vector<128x128xf32>
    %cst = arith.constant dense<0.000000e+00> : vector<16x128xf32>
    %2 = tpu.matmul %0, %1, %cst {dimension_numbers = #tpu.dot_dimension_numbers<[1], [0], [0], [1], [0, 0, 1, 1], [], []>} : vector<16x128xf32>, vector<128x128xf32>, vector<16x128xf32> -> vector<16x128xf32>
    %c0_3 = arith.constant 0 : index
    %c0_4 = arith.constant 0 : index
    %3 = vector.load %arg3[%c0_3, %c0_4] : memref<2x128xf32, #tpu.memory_space<vmem>>, vector<1x128xf32>
    %4 = vector.broadcast %3 : vector<1x128xf32> to vector<16x128xf32>
    %5 = arith.addf %2, %4 : vector<16x128xf32>
    %6 = math.tanh %5 : vector<16x128xf32>
    %c1 = arith.constant 1 : index
    %c0_5 = arith.constant 0 : index
    %7 = vector.load %arg3[%c1, %c0_5] : memref<2x128xf32, #tpu.memory_space<vmem>>, vector<1x128xf32>
    %8 = vector.broadcast %7 : vector<1x128xf32> to vector<16x128xf32>
    %9 = arith.addf %6, %8 : vector<16x128xf32>
    %c0_6 = arith.constant 0 : index
    %c0_7 = arith.constant 0 : index
    %10 = vector.load %arg4[%c0_6, %c0_7] : memref<16x128xf32, #tpu.memory_space<vmem>>, vector<16x128xf32>
    tpu.vector_store %arg4[%c0_6, %c0_7], %9 {strides = array<i32>} : memref<16x128xf32, #tpu.memory_space<vmem>>, vector<16x128xf32>,
    return
  }
  func.func @transform_0(%arg0: i32) -> (i32, i32) {
    %c0_i32 = arith.constant 0 : i32
    %c0_i32_0 = arith.constant 0 : i32
    return %arg0, %c0_i32 : i32, i32
  }
  func.func @transform_1(%arg0: i32) -> (i32, i32) {
    %c0_i32 = arith.constant 0 : i32
    %c0_i32_0 = arith.constant 0 : i32
    %c0_i32_1 = arith.constant 0 : i32
    return %c0_i32, %c0_i32_0 : i32, i32
  }
  func.func @transform_2(%arg0: i32) -> (i32, i32) {
    %c0_i32 = arith.constant 0 : i32
    %c0_i32_0 = arith.constant 0 : i32
    %c0_i32_1 = arith.constant 0 : i32
    return %c0_i32, %c0_i32_0 : i32, i32
  }
  func.func @transform_3(%arg0: i32) -> (i32, i32) {
    %c0_i32 = arith.constant 0 : i32
    %c0_i32_0 = arith.constant 0 : i32
    return %arg0, %c0_i32 : i32, i32
  }
}

</mosaic_0001>

<bundles_post_ra>
// kernel: tpu_custom_call.1
= control target key start
LH: loop header
LB: loop body
LE: loop exit
PB: predicated region body
PF: predicated region fallthrough
CT: control target
= control target key end

     0   :  { %8 = vsyncpa [#allocation3], 0  ;;  %s308_s0 = inlined_call_operand.hbm [shape: f32[16,128], index: 0, kind: input, shape index: {}]   ;;  %s309_s1 = inlined_call_operand.hbm [shape: f32[128,128], index: 1, kind: input, shape index: {}]   ;;  %s310_s2 = inlined_call_operand.hbm [shape: f32[2,128], index: 2, kind: input, shape index: {}]   ;;  %s311_s3 = inlined_call_operand.hbm [shape: f32[16,128], index: 3, kind: output, shape index: {}]  }
   0x1   :  { %9 = vsyncpa [#allocation6], 0 }
   0x2   :  { %10 = vsyncpa [#allocation4], 0  ;;  %s28_s14 = sshll.u32 %s309_s1, 4  ;;  %s261_s15 = smov [#allocation5]   ;;  %s29_s14 = int_to_ptr.hbm [resolvable:$true] %s28_s14 }
   0x3   :  { %s30_s16 = sshll.u32 %s261_s15, 4  ;;  %s15_s19 = sshll.u32 %s308_s0, 4  ;;  %s31_s16 = int_to_ptr.vmem [resolvable:$true] %s30_s16  ;;  %s16_s19 = int_to_ptr.hbm [resolvable:$true] %s15_s19 }
   0x4   :  { %s262_s20 = smov 128   ;;  %s263_s21 = smov 8  }
   0x5   :  { %36 = dma.hbm_to_vmem [thread:$0]  %s29_s14, 2048, %s31_s16, [#allocation6], %s262_s20, %s262_s20, %s263_s21  }
   0x6   :  { %s264_s22 = smov [#allocation2]   ;;  %s42_s1 = sshll.u32 %s310_s2, 4  ;;  %s43_s1 = int_to_ptr.hbm [resolvable:$true] %s42_s1 }
   0x7   :  { %s17_s23 = sshll.u32 %s264_s22, 4  ;;  %s265_s0 = smov [#allocation7]   ;;  %s18_s23 = int_to_ptr.vmem [resolvable:$true] %s17_s23 }
   0x8   :  { %23 = dma.hbm_to_vmem [thread:$0]  %s16_s19, 256, %s18_s23, [#allocation3], %s262_s20, %s262_s20, %s263_s21  }
   0x9   :  { %s44_s26 = sshll.u32 %s265_s0, 4  ;;  %s45_s26 = int_to_ptr.vmem [resolvable:$true] %s44_s26 }
   0xa   :  { %47 = dma.hbm_to_vmem [thread:$0]  %s43_s1, 32, %s45_s26, [#allocation6]  }
   0xb   :  { %255 = dma.done.wait [#allocation3], 256  }
   0xc   :  { %256 = vsyncadd [#allocation3], 4294967040 }
   0xd   :  { %257 = dma.done.wait [#allocation6], 2080  }
   0xe   :  { %258 = vsyncadd [#allocation6], 4294965216  ;;  %v77_v0 = vld [vmem:[#allocation5 + $0x78] sm:$0xff]  ;;  %v76_v1 = vld [vmem:[#allocation5 + $0x70] sm:$0xff]  ;;  %s266_s2 = smov [#allocation8]   ;;  %s117_s30 = sshll.u32 %s311_s3, 4  ;;  %s118_s30 = int_to_ptr.hbm [resolvable:$true] %s117_s30 }
   0xf   :  { %80 = vmatpush.msra.mxu0 %v77_v0  ;;  %131 = vmatpush.msra.mxu1 %v77_v0  ;;  %v75_v2 = vld [vmem:[#allocation5 + $0x68] sm:$0xff]  ;;  %v74_v3 = vld [vmem:[#allocation5 + $0x60] sm:$0xff]  ;;  %v73_v4 = vld [vmem:[#allocation5 + $0x58] sm:$0xff]  ;;  %s115_s27 = sshll.u32 %s266_s2, 4  ;;  %s116_s27 = int_to_ptr.vmem [resolvable:$true] %s115_s27 }
  0x10   :  { %v72_v5 = vld [vmem:[#allocation5 + $0x50] sm:$0xff]  ;;  %v71_v6 = vld [vmem:[#allocation5 + $0x48] sm:$0xff]  ;;  %v70_v7 = vld [vmem:[#allocation5 + $0x40] sm:$0xff] }
  0x11   :  { %81 = vmatpush.msra.mxu0 %v76_v1  ;;  %132 = vmatpush.msra.mxu1 %v76_v1  ;;  %v69_v8 = vld [vmem:[#allocation5 + $0x38] sm:$0xff]  ;;  %v68_v9 = vld [vmem:[#allocation5 + $0x30] sm:$0xff]  ;;  %v67_v10 = vld [vmem:[#allocation5 + $0x28] sm:$0xff] }
  0x12   :  { %v66_v11 = vld [vmem:[#allocation5 + $0x20] sm:$0xff]  ;;  %v65_v12 = vld [vmem:[#allocation5 + $0x18] sm:$0xff]  ;;  %v64_v13 = vld [vmem:[#allocation5 + $0x10] sm:$0xff] }
  0x13   :  { %82 = vmatpush.msra.mxu0 %v75_v2  ;;  %133 = vmatpush.msra.mxu1 %v75_v2  ;;  %v63_v14 = vld [vmem:[#allocation5 + $0x8] sm:$0xff]  ;;  %v62_v15 = vld [vmem:[#allocation5] sm:$0xff]  ;;  %v60_v16 = vld [vmem:[#allocation2] sm:$0xff] }
  0x14   :  { %v61_v17 = vld [vmem:[#allocation2 + $0x8] sm:$0xff]  ;;  %v153_v18 = vld [vmem:[#allocation7] ss:$0 sm:$0xff]  ;;  %v154_v23 = vld [vmem:[#allocation7 + $0x1] ss:$0 sm:$0xff] }
  0x15   :  { %83 = vmatpush.msra.mxu0 %v74_v3  ;;  %134 = vmatpush.msra.mxu1 %v74_v3 }
  0x17   :  { %84 = vmatpush.msra.mxu0 %v73_v4  ;;  %135 = vmatpush.msra.mxu1 %v73_v4 }
  0x19   :  { %85 = vmatpush.msra.mxu0 %v72_v5  ;;  %136 = vmatpush.msra.mxu1 %v72_v5 }
  0x1b   :  { %86 = vmatpush.msra.mxu0 %v71_v6  ;;  %137 = vmatpush.msra.mxu1 %v71_v6 }
  0x1d   :  { %87 = vmatpush.msra.mxu0 %v70_v7  ;;  %138 = vmatpush.msra.mxu1 %v70_v7 }
  0x1f   :  { %88 = vmatpush.msra.mxu0 %v69_v8  ;;  %139 = vmatpush.msra.mxu1 %v69_v8 }
  0x21   :  { %89 = vmatpush.msra.mxu0 %v68_v9  ;;  %140 = vmatpush.msra.mxu1 %v68_v9 }
  0x23   :  { %90 = vmatpush.msra.mxu0 %v67_v10  ;;  %141 = vmatpush.msra.mxu1 %v67_v10 }
  0x25   :  { %91 = vmatpush.msra.mxu0 %v66_v11  ;;  %142 = vmatpush.msra.mxu1 %v66_v11 }
  0x27   :  { %92 = vmatpush.msra.mxu0 %v65_v12  ;;  %143 = vmatpush.msra.mxu1 %v65_v12 }
  0x29   :  { %93 = vmatpush.msra.mxu0 %v64_v13  ;;  %144 = vmatpush.msra.mxu1 %v64_v13 }
  0x2b   :  { %94 = vmatpush.msra.mxu0 %v63_v14  ;;  %145 = vmatpush.msra.mxu1 %v63_v14 }
  0x2d   :  { %95 = vmatpush.msra.mxu0 %v62_v15  ;;  %146 = vmatpush.msra.mxu1 %v62_v15 }
  0x2e   :  { %96 = vmatmul.f32.vlgmr.msra.gmra.mxu0 %v60_v16  ;;  %99 = vmatmul.f32.vlgmr.msra.gmra.mxu1 %v61_v17 }
  0xab   :  { %v97_v19 = vpop.f32.mrf.mxu0  ;;  %v100_v20 = vpop.f32.mrf.mxu1 }
  0xac   :  { %v98_v21 = vadd.f32 %v153_v18, %v97_v19  ;;  %v101_v22 = vadd.f32 %v153_v18, %v100_v20 }
  0xae   :  { %155 = vtanh.f32 %v98_v21 }
  0xaf   :  { %157 = vtanh.f32 %v101_v22 }
  0xb4   :  { %v156_v24 = vpop.eup %155 }
  0xb5   :  { %v158_v25 = vpop.eup %157  ;;  %v107_v26 = vadd.f32 %v156_v24, %v154_v23 }
  0xb6   :  { %v108_v27 = vadd.f32 %v158_v25, %v154_v23 }
  0xb7   :  { %109 = vst [vmem:[#allocation8] sm:$0xff] %v107_v26 }
  0xb8   :  { %110 = vst [vmem:[#allocation8 + $0x8] sm:$0xff] %v108_v27 }
  0xb9   :  { %123 = dma.vmem_to_hbm [thread:$0]  %s116_s27, 256, %s118_s30, [#allocation4], %s262_s20, %s262_s20, %s263_s21  }
  0xba   :  { %259 = dma.done.wait [#allocation4], 256  }
  0xbb   :  { %260 = vsyncadd [#allocation4], 4294967040 }
  0xbc   :  { %128 = vsyncpa [#allocation3], 1 }
  0xbd   :  { %129 = vsyncpa [#allocation6], 1 }
  0xbe   :  { %130 = vsyncpa [#allocation4], 1 }

</bundles_post_ra>
